<compile_context>
chip_gen: v5e
topology: v5e:2x2
jax: 0.10.0
libtpu: 0.0.40
codegen_flags: <defaults>
</compile_context>

<pallas_src>
import functools

import jax
import jax.numpy as jnp
from jax.experimental import pallas as pl
from jax.experimental.pallas import tpu as pltpu


def _copy_kernel(x_ref, o_ref):
    # Pure element-wise copy of the current lane-dense (block_rows, lanes) tile.
    o_ref[...] = x_ref[...]


# ~4 MiB per block => 2 buffers x (in + out) x 4 MiB = 16 MiB of VMEM,
# comfortably within the scoped limit on v5e / v6e / v7x.
_TARGET_BLOCK_BYTES = 4 * 1024 * 1024
_VMEM_LIMIT_BYTES = 32 * 1024 * 1024


def _identity_copy_2d(flat2d):
    """Materialized identity copy of a lane-dense (rows, lanes) f32/bf16/... slab."""
    rows, lanes = flat2d.shape
    itemsize = jnp.dtype(flat2d.dtype).itemsize
    row_bytes = lanes * itemsize

    block_rows = max(1, _TARGET_BLOCK_BYTES // row_bytes)
    block_rows = min(block_rows, rows)
    if block_rows < rows:
        # Keep the sublane dim a multiple of 8 when it is not the full extent.
        block_rows = max(8, (block_rows // 8) * 8)

    grid = (pl.cdiv(rows, block_rows),)
    spec = pl.BlockSpec((block_rows, lanes), lambda i: (i, 0))
    bytes_accessed = 2 * rows * lanes * itemsize  # read + write

    return pl.pallas_call(
        _copy_kernel,
        out_shape=jax.ShapeDtypeStruct(flat2d.shape, flat2d.dtype),
        grid=grid,
        in_specs=[spec],
        out_specs=spec,
        input_output_aliases={0: 0},
        compiler_params=pltpu.CompilerParams(
            dimension_semantics=("parallel",),
            vmem_limit_bytes=_VMEM_LIMIT_BYTES,
        ),
        cost_estimate=pl.CostEstimate(
            flops=0, transcendentals=0, bytes_accessed=bytes_accessed
        ),
    )(flat2d)


def _identity_copy_whole(x):
    """Fallback for element counts not divisible by 128: single whole-array block."""
    return pl.pallas_call(
        _copy_kernel,
        out_shape=jax.ShapeDtypeStruct(x.shape, x.dtype),
        input_output_aliases={0: 0},
    )(x)


def _hook_forward_impl(x):
    total = x.size
    lanes = next((c for c in (1024, 512, 256, 128) if total % c == 0), 0)
    if lanes:
        flat = x.reshape(total // lanes, lanes)  # lane-dense 2D slab (layout plumbing only)
        return _identity_copy_2d(flat).reshape(x.shape)
    return _identity_copy_whole(x)


@functools.partial(jax.custom_vjp, nondiff_argnums=(1, 2))
def hook_layer_forward(x, layer_idx=-1, break_layer_idx=-1):
    """Identity forward pass of HookLayer, run through a Pallas TPU kernel."""
    return _hook_forward_impl(x)


def _hook_fwd(x, layer_idx, break_layer_idx):
    return _hook_forward_impl(x), None


def _hook_bwd(layer_idx, break_layer_idx, _residual, g):
    # TODO(synk): HookFunc.backward stashes grad_output into a global
    # (gl.set_value('backward_ctx', grad_output)) when layer_idx ==
    # break_layer_idx; that host-side side effect has no Pallas equivalent.
    # The gradient itself is pass-through, matching the PyTorch layer.
    return (g,)


hook_layer_forward.defvjp(_hook_fwd, _hook_bwd)


if __name__ == "__main__":
    key = jax.random.PRNGKey(0)
    # NCHW, consistent with the VGG conv context the hook layer sits in.
    x = jax.random.normal(key, (2, 4, 16, 16), dtype=jnp.float32)

    y = hook_layer_forward(x, 3, 3)
    jax.block_until_ready(y)

    assert y.shape == x.shape and y.dtype == x.dtype
    assert bool(jnp.all(y == x))
    print("KERNEL_OK")
</pallas_src>

<mosaic_0001>
module attributes {stable_mosaic.version = 11 : i64} {
  func.func @_copy_kernel(%arg0: i32, %arg1: memref<2x1024xf32, #tpu.memory_space<vmem>>, %arg2: memref<2x1024xf32, #tpu.memory_space<vmem>>) attributes {dimension_semantics = [#tpu.dimension_semantics<parallel>], iteration_bounds = array<i64: 1>, scalar_prefetch = 0 : i64, scratch_operands = 0 : i64, tpu.core_type = #tpu.core_type<tc>, window_params = [{transform_indices = @transform_0, window_bounds = array<i64: 2, 1024>}, {transform_indices = @transform_1, window_bounds = array<i64: 2, 1024>}]} {
    %c0 = arith.constant 0 : index
    %c0_0 = arith.constant 0 : index
    %0 = vector.load %arg1[%c0, %c0_0] : memref<2x1024xf32, #tpu.memory_space<vmem>>, vector<2x1024xf32>
    %c0_1 = arith.constant 0 : index
    %c0_2 = arith.constant 0 : index
    %1 = vector.load %arg2[%c0_1, %c0_2] : memref<2x1024xf32, #tpu.memory_space<vmem>>, vector<2x1024xf32>
    tpu.vector_store %arg2[%c0_1, %c0_2], %0 {strides = array<i32>} : memref<2x1024xf32, #tpu.memory_space<vmem>>, vector<2x1024xf32>,
    return
  }
  func.func @transform_0(%arg0: i32) -> (i32, i32) {
    %c0_i32 = arith.constant 0 : i32
    %c0_i32_0 = arith.constant 0 : i32
    return %arg0, %c0_i32 : i32, i32
  }
  func.func @transform_1(%arg0: i32) -> (i32, i32) {
    %c0_i32 = arith.constant 0 : i32
    %c0_i32_0 = arith.constant 0 : i32
    return %arg0, %c0_i32 : i32, i32
  }
}

</mosaic_0001>

<bundles_post_ra>
// kernel: tpu_custom_call.1
= control target key start
LH: loop header
LB: loop body
LE: loop exit
PB: predicated region body
PF: predicated region fallthrough
CT: control target
= control target key end

     0   :  { %6 = vsyncpa [#allocation3], 0  ;;  %s116_s0 = inlined_call_operand.hbm [shape: f32[2,1024], index: 0, kind: input, shape index: {}, may-alias: {0,1}]   ;;  %s117_s1 = inlined_call_operand.hbm [shape: f32[2,1024], index: 1, kind: output, shape index: {}, may-alias: {0,1}]  }
   0x1   :  { %7 = vsyncpa [#allocation4], 0  ;;  %s13_s8 = sshll.u32 %s116_s0, 4  ;;  %s98_s9 = smov [#allocation2]   ;;  %s14_s8 = int_to_ptr.hbm [resolvable:$true] %s13_s8 }
   0x2   :  { %s15_s10 = sshll.u32 %s98_s9, 4  ;;  %s16_s10 = int_to_ptr.vmem [resolvable:$true] %s15_s10 }
   0x3   :  { %18 = dma.hbm_to_vmem [thread:$0]  %s14_s8, 256, %s16_s10, [#allocation3]  }
   0x4   :  { %94 = dma.done.wait [#allocation3], 256  }
   0x5   :  { %95 = vsyncadd [#allocation3], 4294967040  ;;  %s99_s11 = smov [#allocation5]   ;;  %s34_s15 = sshll.u32 %s117_s1, 4  ;;  %v23_v0 = vld [vmem:[#allocation2] sm:$0xff]  ;;  %v24_v1 = vld [vmem:[#allocation2 + $0x8] sm:$0xff]  ;;  %s35_s15 = int_to_ptr.hbm [resolvable:$true] %s34_s15 }
   0x6   :  { %s32_s12 = sshll.u32 %s99_s11, 4  ;;  %25 = vst [vmem:[#allocation5] sm:$0xff] %v23_v0  ;;  %s33_s12 = int_to_ptr.vmem [resolvable:$true] %s32_s12 }
   0x7   :  { %26 = vst [vmem:[#allocation5 + $0x8] sm:$0xff] %v24_v1 }
   0x8   :  { %37 = dma.vmem_to_hbm [thread:$0]  %s33_s12, 256, %s35_s15, [#allocation4]  }
   0x9   :  { %96 = dma.done.wait [#allocation4], 256  }
   0xa   :  { %97 = vsyncadd [#allocation4], 4294967040 }
   0xb   :  { %42 = vsyncpa [#allocation3], 1 }
   0xc   :  { %43 = vsyncpa [#allocation4], 1 }

</bundles_post_ra>
